<compile_context>
chip_gen: v7x
topology: tpu7x:2x2x1
jax: 0.10.0
libtpu: 0.0.40
codegen_flags: <defaults>
</compile_context>

<pallas_src>
import functools

import jax
import jax.numpy as jnp
from jax import lax
from jax.experimental import pallas as pl
from jax.experimental.pallas import tpu as pltpu

_MIB = 1024 * 1024


# ----------------------------- helpers --------------------------------------
def _int_pow(x, p):
    """x**p for positive integer p via exponentiation-by-squaring (VALU only)."""
    result = None
    base = x
    while p > 0:
        if p & 1:
            result = base if result is None else result * base
        p >>= 1
        if p:
            base = base * base
    return result


def _pow_elem(x, power):
    if float(power) == float(int(power)) and int(power) >= 1:
        return _int_pow(x, int(power))
    return jnp.power(x, power)  # generic fallback (transcendental path)


def _inv_root(s, power):
    """s ** (-1/power); common roots use EUP reciprocal/rsqrt instead of divide."""
    if power == 1:
        return pl.reciprocal(s, approx=False)
    if power == 2:
        return lax.rsqrt(s)
    if power == 4:
        return lax.rsqrt(jnp.sqrt(s))
    return jnp.power(s, -1.0 / power)


def _sublane_packing(itemsize):
    # 8 rows/sublane-tile for f32, 16 for bf16, 32 for int8/fp8.
    return max(8, 32 // max(1, itemsize))


def _round_up(v, m):
    return ((v + m - 1) // m) * m


def _vmem_cap_bytes():
    """Usable VMEM budget on this chip (physical capacity minus headroom)."""
    try:
        phys = int(pltpu.get_tpu_info().vmem_capacity_bytes)
    except Exception:
        phys = 64 * _MIB  # conservative: assume v7x-sized VMEM if query fails
    return max(16 * _MIB, int(phys * 0.85))  # ~54 MiB on v7x, ~108 MiB on v5e/v6e


def _block_spec(shape, index_map, buffered=None):
    if buffered is not None:
        try:
            return pl.BlockSpec(shape, index_map, pipeline_mode=pl.Buffered(buffered))
        except (TypeError, AttributeError):
            pass  # older jax without pipeline_mode / Buffered — default 2-deep
    return pl.BlockSpec(shape, index_map)


# --------------------------- single-pass kernel ------------------------------
def _normalize_kernel(x_ref, o_ref, *, power):
    # x_ref: (tile_n, C) block in VMEM
    x = x_ref[...].astype(jnp.float32)
    s = jnp.sum(_pow_elem(x, power), axis=-1, keepdims=True)
    o_ref[...] = (x * _inv_root(s, power)).astype(o_ref.dtype)


def _pick_tile_n(n, c, itemsize, target_block_bytes):
    """Row-tile: biggest (dtype-packed) tile near target, but >= 2 grid steps."""
    pack = _sublane_packing(itemsize)
    work_itemsize = max(itemsize, 4)  # kernel upcasts to f32
    rows = max(pack, target_block_bytes // max(1, c * work_itemsize))
    rows = max(pack, (rows // pack) * pack)
    # >= 2 grid steps when N allows, so v7x can shard rows across both TCs.
    half = _round_up((n + 1) // 2, pack)
    rows = min(rows, max(pack, half))
    # never exceed the sublane-padded row count
    rows = min(rows, _round_up(n, pack))
    return max(pack, rows)


# ------------------------ channel-chunked (wide C) ---------------------------
def _rownorm_kernel(x_ref, inv_ref, *, power, c_total):
    c = pl.program_id(1)

    @pl.when(c == 0)
    def _():
        inv_ref[...] = jnp.zeros_like(inv_ref)

    x = x_ref[...].astype(jnp.float32)
    xp = _pow_elem(x, power)
    # Mask padded tail channels so garbage lanes never feed the row accumulator.
    col = lax.broadcasted_iota(jnp.int32, x.shape, 1) + c * x.shape[-1]
    xp = jnp.where(col < c_total, xp, 0.0)
    inv_ref[...] += jnp.sum(xp, axis=-1, keepdims=True)

    @pl.when(c == pl.num_programs(1) - 1)
    def _():
        inv_ref[...] = _inv_root(inv_ref[...], power)


def _scale_kernel(x_ref, inv_ref, o_ref):
    o_ref[...] = (x_ref[...].astype(jnp.float32) * inv_ref[...]).astype(o_ref.dtype)


def _normalize_chunked(x, power, *, vmem_cap, target_block_bytes,
                       tile_n=None, tile_c=None):
    """Two-pass path for rows too wide to hold all of C in one VMEM block."""
    N, C = x.shape
    itemsize = jnp.dtype(x.dtype).itemsize
    pack = _sublane_packing(itemsize)
    work_itemsize = max(itemsize, 4)

    if tile_c is None:
        tile_c = (target_block_bytes // max(1, pack * work_itemsize) // 128) * 128
        tile_c = max(128, min(tile_c, _round_up(C, 128)))
    if tile_n is None:
        rows = max(pack, target_block_bytes // max(1, tile_c * work_itemsize))
        rows = max(pack, (rows // pack) * pack)
        tile_n = min(rows, _round_up(N, pack))

    block_bytes = tile_n * tile_c * work_itemsize
    vmem_limit = int(min(max(32 * _MIB, 6 * block_bytes), vmem_cap))
    grid = (pl.cdiv(N, tile_n), pl.cdiv(C, tile_c))

    # Pass 1: per-row inverse norm (channel axis is the trailing reduction axis;
    # the (tile_n, 1) output block stays resident across it).
    inv = pl.pallas_call(
        functools.partial(_rownorm_kernel, power=power, c_total=C),
        out_shape=jax.ShapeDtypeStruct((N, 1), jnp.float32),
        grid_spec=pltpu.PrefetchScalarGridSpec(
            num_scalar_prefetch=0,
            grid=grid,
            in_specs=[pl.BlockSpec((tile_n, tile_c), lambda i, c: (i, c))],
            out_specs=pl.BlockSpec((tile_n, 1), lambda i, c: (i, 0)),
        ),
        compiler_params=pltpu.CompilerParams(
            dimension_semantics=("parallel", "arbitrary"),
            vmem_limit_bytes=vmem_limit,
        ),
    )(x)

    # Pass 2: stream x again and scale each channel chunk by the row inv-norm.
    return pl.pallas_call(
        _scale_kernel,
        out_shape=jax.ShapeDtypeStruct((N, C), x.dtype),
        grid_spec=pltpu.PrefetchScalarGridSpec(
            num_scalar_prefetch=0,
            grid=grid,
            in_specs=[pl.BlockSpec((tile_n, tile_c), lambda i, c: (i, c)),
                      pl.BlockSpec((tile_n, 1), lambda i, c: (i, 0))],
            out_specs=pl.BlockSpec((tile_n, tile_c), lambda i, c: (i, c)),
        ),
        compiler_params=pltpu.CompilerParams(
            dimension_semantics=("parallel", "parallel"),
            vmem_limit_bytes=vmem_limit,
        ),
    )(x, inv)


# ------------------------------- wrapper -------------------------------------
def normalize(x, power=2, tile_n=None, target_block_bytes=8 * _MIB):
    """Pallas equivalent of Normalize(power).forward(x) for x of shape (N, C)."""
    N, C = x.shape
    itemsize = jnp.dtype(x.dtype).itemsize
    pack = _sublane_packing(itemsize)
    work_itemsize = max(itemsize, 4)
    vmem_cap = _vmem_cap_bytes()

    # Wide-row fallback: even a minimum (pack-row) block holding all of C would
    # exceed the double-buffered VMEM budget -> channel-chunked two-pass path.
    if tile_n is None and 6 * pack * C * work_itemsize > vmem_cap:
        return _normalize_chunked(x, power, vmem_cap=vmem_cap,
                                  target_block_bytes=target_block_bytes)

    if tile_n is None:
        tile_n = _pick_tile_n(N, C, itemsize, target_block_bytes)

    num_steps = pl.cdiv(N, tile_n)
    block_bytes = tile_n * C * work_itemsize
    # Headroom for double-buffered input + output blocks; raised above v5e's
    # 16 MiB scoped default, capped at this chip's physical VMEM (v7x: 64 MiB).
    vmem_limit = int(min(max(32 * _MIB, 6 * block_bytes), vmem_cap))

    # Small blocks: DMA issue latency is no longer hidden by 2-deep pipelining.
    small = block_bytes <= 1 * _MIB and num_steps >= 3
    in_spec = _block_spec((tile_n, C), lambda i: (i, 0),
                          buffered=3 if small else None)

    kernel = functools.partial(_normalize_kernel, power=power)
    return pl.pallas_call(
        kernel,
        out_shape=jax.ShapeDtypeStruct((N, C), x.dtype),
        grid_spec=pltpu.PrefetchScalarGridSpec(
            num_scalar_prefetch=0,
            grid=(num_steps,),
            in_specs=[in_spec],
            out_specs=pl.BlockSpec((tile_n, C), lambda i: (i, 0)),
        ),
        compiler_params=pltpu.CompilerParams(
            dimension_semantics=("parallel",),
            vmem_limit_bytes=vmem_limit,
        ),
    )(x)


# -------------------------------- tests --------------------------------------
if __name__ == "__main__":
    def ref_normalize(x, power):
        # Mirrors the PyTorch forward exactly (plain JAX, f32).
        xf = x.astype(jnp.float32)
        norm = jnp.power(
            jnp.sum(jnp.power(xf, power), axis=1, keepdims=True), 1.0 / power
        )
        return xf / norm

    key = jax.random.PRNGKey(0)
    k1, k2, k3, k4, k5 = jax.random.split(key, 5)

    # Case 1: lane-dense channels, power=2, auto tile (grid >= 2 steps).
    x = jax.random.normal(k1, (64, 256), dtype=jnp.float32)
    out = jax.block_until_ready(normalize(x, power=2))
    assert out.shape == x.shape and out.dtype == x.dtype
    assert jnp.allclose(out, ref_normalize(x, 2), atol=1e-5, rtol=1e-5)

    # Case 2: row count not a multiple of the tile (padded tail) and power=4.
    x2 = jax.random.normal(k2, (20, 128), dtype=jnp.float32)
    out2 = jax.block_until_ready(normalize(x2, power=4))
    assert jnp.allclose(out2, ref_normalize(x2, 4), atol=1e-5, rtol=1e-5)

    # Case 3: channel-chunked two-pass path (forced small tiles to exercise it),
    # with C not a multiple of tile_c (padded tail channels are masked).
    x3 = jax.random.normal(k3, (20, 320), dtype=jnp.float32)
    out3 = jax.block_until_ready(
        _normalize_chunked(x3, power=2, vmem_cap=_vmem_cap_bytes(),
                           target_block_bytes=8 * _MIB, tile_n=8, tile_c=128))
    assert out3.shape == x3.shape and out3.dtype == x3.dtype
    assert jnp.allclose(out3, ref_normalize(x3, 2), atol=1e-5, rtol=1e-4)

    # Case 4: explicit small tile -> >=3 grid steps, exercises 3-deep buffering.
    x4 = jax.random.normal(k4, (40, 128), dtype=jnp.float32)
    out4 = jax.block_until_ready(normalize(x4, power=2, tile_n=8))
    assert jnp.allclose(out4, ref_normalize(x4, 2), atol=1e-5, rtol=1e-5)

    # Case 5: bf16 input (dtype-aware 16-row sublane packing, f32 compute).
    x5 = jax.random.normal(k5, (32, 128), dtype=jnp.float32).astype(jnp.bfloat16)
    out5 = jax.block_until_ready(normalize(x5, power=2))
    assert out5.dtype == jnp.bfloat16
    assert jnp.allclose(out5.astype(jnp.float32), ref_normalize(x5, 2),
                        atol=1e-2, rtol=3e-2)

    print("KERNEL_OK")
</pallas_src>

<mosaic_0001>
module attributes {stable_mosaic.version = 11 : i64} {
  func.func @_normalize_kernel(%arg0: i32, %arg1: memref<32x256xf32, #tpu.memory_space<vmem>>, %arg2: memref<32x256xf32, #tpu.memory_space<vmem>>) attributes {dimension_semantics = [#tpu.dimension_semantics<parallel>], iteration_bounds = array<i64: 2>, scalar_prefetch = 0 : i64, scratch_operands = 0 : i64, tpu.core_type = #tpu.core_type<tc>, window_params = [{transform_indices = @transform_0, window_bounds = array<i64: 32, 256>}, {transform_indices = @transform_1, window_bounds = array<i64: 32, 256>}]} {
    %c0 = arith.constant 0 : index
    %c0_0 = arith.constant 0 : index
    %0 = vector.load %arg1[%c0, %c0_0] : memref<32x256xf32, #tpu.memory_space<vmem>>, vector<32x256xf32>
    %1 = arith.mulf %0, %0 : vector<32x256xf32>
    %cst = arith.constant dense<0.000000e+00> : vector<32xf32>
    %2 = vector.multi_reduction <add>, %1, %cst [1] : vector<32x256xf32> to vector<32xf32>
    %3 = vector.shape_cast %2 : vector<32xf32> to vector<32x1xf32>
    %4 = math.rsqrt %3 : vector<32x1xf32>
    %5 = vector.broadcast %4 : vector<32x1xf32> to vector<32x256xf32>
    %6 = arith.mulf %0, %5 : vector<32x256xf32>
    %c0_1 = arith.constant 0 : index
    %c0_2 = arith.constant 0 : index
    %7 = vector.load %arg2[%c0_1, %c0_2] : memref<32x256xf32, #tpu.memory_space<vmem>>, vector<32x256xf32>
    tpu.vector_store %arg2[%c0_1, %c0_2], %6 {strides = array<i32>} : memref<32x256xf32, #tpu.memory_space<vmem>>, vector<32x256xf32>,
    return
  }
  func.func @transform_0(%arg0: i32) -> (i32, i32) {
    %c0_i32 = arith.constant 0 : i32
    %c0_i32_0 = arith.constant 0 : i32
    return %arg0, %c0_i32 : i32, i32
  }
  func.func @transform_1(%arg0: i32) -> (i32, i32) {
    %c0_i32 = arith.constant 0 : i32
    %c0_i32_0 = arith.constant 0 : i32
    return %arg0, %c0_i32 : i32, i32
  }
}

</mosaic_0001>

<bundles_post_ra>
// kernel: tpu_custom_call.1
= control target key start
LH: loop header
LB: loop body
LE: loop exit
PB: predicated region body
PF: predicated region fallthrough
CT: control target
= control target key end

     0   :  { %6 = vsyncpa [#allocation3], 0  ;;  %s632_s0 = inlined_call_operand.hbm [shape: f32[64,256], index: 0, kind: input, shape index: {}]   ;;  %s633_s1 = inlined_call_operand.hbm [shape: f32[64,256], index: 1, kind: output, shape index: {}]  }
   0x1   :  { %8 = vsyncpa [#allocation3 + $0x1], 0 }
   0x2   :  { %9 = vsyncpa [#allocation4], 0 }
   0x3   :  { %11 = vsyncpa [#allocation4 + $0x1], 0  ;;  %s466_s6 = smov 0   ;;  %s468_s7 = smov 0  }
   0x4   :  { %s470_s8 = smov 0   ;;  %s472_s9 = smov 0  }
   0x5 LB: > { %s487_s10 = sadd.s32 4294967295, %s448_s9   ;;  %s274_s11 = sadd.s32 4294967294, %s448_s9   ;;  %s448_s9 = sphi %s472_s9, %s646_s9   ;;  %s444_s8 = sphi %s470_s8, %s645_s8   ;;  %s440_s7 = sphi %s468_s7, %s644_s7   ;;  %s436_s6 = sphi %s466_s6, %s643_s6  }
   0x6   : > { %s491_s12 = sadd.s32 1, %s448_s9   ;;  %s24_s13 = sadd.s32 1, %s444_s8 }
   0x7   : > { %s21_s14 = ssub.s32 %s448_s9, %s491_s12  ;;  %p31_p0 = scmp.ne.s32.totalorder %s444_s8, %s440_s7 }
   0x8   : > { %p22_p1 = scmp.eq.s32.totalorder %s21_s14, 0  ;;  %p32_p2 = scmp.eq.s32.totalorder %s448_s9, 0 }
   0x9   : > { %p37_p3 = scmp.ne.s32.totalorder %s440_s7, %s436_s6  ;;  %p38_p4 = scmp.eq.s32.totalorder %s487_s10, 0 }
   0xa   : > { %s503_s15 = scalar_select %p22_p1, %s444_s8, %s24_s13  }
   0xb   : > { %p505_p5 = por %p32_p2, %p31_p0  ;;  %p509_p6 = por %p38_p4, %p37_p3 }
   0xc   : > { %p61_p7 = scmp.eq.s32.totalorder %s487_s10, 1  ;;  %p67_p8 = scmp.eq.s32.totalorder %s274_s11, 1 }
   0xd   : > { %p306_p10 = scmp.lt.s32.totalorder %s448_s9, 2  ;;  %s87_s20 = sand.u32 1, %s444_s8  }
   0xe   : > { %p516_p11 = por %p61_p7, %p31_p0  ;;  %p520_p12 = por %p67_p8, %p37_p3 }
   0xf   : > { %s291_s21 = sshll.u32 %s448_s9, 10  ;;  %s277_s22 = sshll.u32 %s87_s20, 6 }
  0x10   : > { %s637_s18 = scalar_select %p516_p11, 1, 0 }
  0x11   : > { %s638_s19 = scalar_select %p520_p12, 1, 0 }
  0x12   : > { %s529_s25 = scalar_lea.hbm %s632_s0, %s291_s21  ;;  %s91_s26 = scalar_lea.vmem [#allocation2], %s277_s22 }
  0x13   : > { %s99_s27 = sshll.u32 %s91_s26, 4  ;;  %p533_p13 = pnand %p306_p10, %p505_p5  ;;  %s537_s27 = int_to_ptr.vmem [resolvable:$true] %s99_s27 }
  0x14   : > { %s539_s29 = scalar_lea.sflag [#allocation3], %s87_s20  ;;  %s352_s30 = scalar_lea.hbm %s529_s25, 1024 }
  0x15   : > { %p353_p0 = scmp.ne.s32.totalorder %s529_s25, %s352_s30  ;;  %p354_p1 = pneg %p533_p13 }
  0x16   : > { %s357_s4 = scalar_lea.hbm %s632_s0, 2048  ;;  %p358_p4 = scmp.lt.u32.totalorder %s529_s25, %s632_s0 }
  0x17   : > { %p355_p2 = pnand %p354_p1, %p353_p0  ;;  %p359_p5 = scmp.lt.u32.totalorder %s357_s4, %s352_s30 }
  0x18   : > { %p361_p8 = scmp.lt.u32.totalorder %s352_s30, %s529_s25 }
  0x19   : > { %p356_p3 = pneg %p355_p2  ;;  %p360_p7 = por %p359_p5, %p358_p4 }
  0x1b   : > { %p362_p10 = por %p361_p8, %p360_p7 }
  0x1d   : > { %p363_p9 = pnand %p362_p10, %p356_p3 }
  0x1f   : > { %366 = shalt.err (!%p363_p9)
}
  0x20   : > { %s367_s13 = scalar_lea.vmem %s537_s27, 1024  ;;  %s450_s14 = smov [#allocation2]  }
  0x21   : > { %p368_p0 = scmp.ne.s32.totalorder %s537_s27, %s367_s13  ;;  %s372_s16 = sshll.u32 %s450_s14, 4  ;;  %s373_s16 = int_to_ptr.vmem [resolvable:$false] %s372_s16 }
  0x22   : > { %s374_s20 = scalar_lea.vmem %s373_s16, 2048  ;;  %p375_p11 = scmp.lt.s32.totalorder %s537_s27, %s373_s16 }
  0x23   : > { %p370_p2 = pnand %p368_p0, %p354_p1  ;;  %p376_p4 = scmp.lt.s32.totalorder %s374_s20, %s367_s13 }
  0x25   : > { %p371_p12 = pneg %p370_p2  ;;  %p377_p5 = por %p376_p4, %p375_p11 }
  0x27   : > { %p378_p7 = pnand %p377_p5, %p371_p12 }
  0x29   : > { %381 = shalt.err (!%p378_p7)
}
  0x2a   : > { %s451_s21 = smov 256   ;;  %s452_s22 = smov 16  }
  0x2b   : > { %301 = dma.hbm_to_vmem [thread:$0]  (!%p533_p13), %s529_s25, 1024, %s537_s27, %s539_s29, %s451_s21, %s451_s21, %s452_s22  }
  0x2c   : > { %p281_p9 = scmp.ge.s32.totalorder %s448_s9, 1  ;;  %p107_p1 = scmp.lt.s32.totalorder %s448_s9, 3 }
  0x2e   : > { %p108_p3 = pnand %p281_p9, %p107_p1 }
  0x2f   : > { %s570_s23 = sand.u32 (!%p108_p3), 1, %s440_s7  }
  0x30   : > { %111 = sbr.rel (%p108_p3) target bundleno = 236 (0xec), region = 24  ;;  %s282_s24 = sshll.u32 (!%p108_p3), %s570_s23, 6 }
  0x31   : > { %s114_s26 = scalar_lea.sflag (!%p108_p3), [#allocation3], %s570_s23  ;;  %s117_s30 = scalar_lea.vmem (!%p108_p3), [#allocation2], %s282_s24 }
  0x37   : > { %427 = dma.done.wait (%p509_p6), %s114_s26, 1024  }
  0x38   : > { %429 = vsyncadd (%p509_p6), %s114_s26, 4294966272  ;;  %v142_v0 = vld [vmem:[%s117_s30 + $0x20] sm:$0xff]  ;;  %v143_v1 = vld [vmem:[%s117_s30 + $0x28] sm:$0xff]  ;;  %s293_s17 = sshll.u32 %s487_s10, 10  ;;  %s135_s25 = scalar_lea.vmem [#allocation5], %s282_s24 }
  0x39   : > { %v138_v2 = vld [vmem:[%s117_s30] sm:$0xff]  ;;  %v150_v3 = vmul.f32 %v142_v0, %v142_v0  ;;  %v151_v4 = vmul.f32 %v143_v1, %v143_v1  ;;  %v139_v5 = vld [vmem:[%s117_s30 + $0x8] sm:$0xff]  ;;  %v144_v7 = vld [vmem:[%s117_s30 + $0x30] sm:$0xff]  ;;  %s201_s27 = sshll.u32 %s135_s25, 4  ;;  %s586_s2 = scalar_lea.hbm %s633_s1, %s293_s17  ;;  %s588_s27 = int_to_ptr.vmem [resolvable:$true] %s201_s27 }
  0x3a   : > { %v146_v6 = vmul.f32 %v138_v2, %v138_v2  ;;  %v145_v8 = vld [vmem:[%s117_s30 + $0x38] sm:$0xff]  ;;  %v147_v9 = vmul.f32 %v139_v5, %v139_v5  ;;  %v152_v10 = vmul.f32 %v144_v7, %v144_v7  ;;  %v140_v12 = vld [vmem:[%s117_s30 + $0x10] sm:$0xff]  ;;  %s187_s10 = scalar_lea.sflag [#allocation4], %s570_s23  ;;  %s382_s3 = scalar_lea.vmem %s588_s27, 1024 }
  0x3b   : > { %v153_v11 = vmul.f32 %v145_v8, %v145_v8  ;;  %v141_v13 = vld [vmem:[%s117_s30 + $0x18] sm:$0xff]  ;;  %v160_v14 = vadd.f32 %v151_v4, %v150_v3  ;;  %v148_v15 = vmul.f32 %v140_v12, %v140_v12  ;;  %p383_p6 = scmp.ne.s32.totalorder %s588_s27, %s382_s3  ;;  %p640_p11 = scmp.ne.s32.totalorder %s637_s18, 0 }
  0x3c   : > { %v149_v16 = vmul.f32 %v141_v13, %v141_v13  ;;  %v154_v17 = vadd.f32 %v147_v9, %v146_v6  ;;  %s453_s4 = smov [#allocation5]  }
  0x3d   : > { %161 = vadd.xlane.f32.xlu1 %v160_v14  ;;  %v163_v18 = vadd.f32 %v153_v11, %v152_v10  ;;  %p384_p12 = pnand %p383_p6, %p640_p11  ;;  %s386_s5 = sshll.u32 %s453_s4, 4  ;;  %s387_s5 = int_to_ptr.vmem [resolvable:$false] %s386_s5 }
  0x3e   : > { %155 = vadd.xlane.f32.xlu0 %v154_v17  ;;  %v157_v19 = vadd.f32 %v149_v16, %v148_v15  ;;  %s388_s11 = scalar_lea.vmem %s387_s5, 2048  ;;  %p389_p8 = scmp.lt.s32.totalorder %s588_s27, %s387_s5 }
  0x3f   : > { %p385_p13 = pneg %p384_p12  ;;  %p390_p10 = scmp.lt.s32.totalorder %s388_s11, %s382_s3 }
  0x41   : > { %164 = vadd.xlane.f32.xlu1 %v163_v18  ;;  %p391_p0 = por %p390_p10, %p389_p8 }
  0x42   : > { %158 = vadd.xlane.f32.xlu0 %v157_v19 }
  0x43   : > { %p392_p2 = pnand %p391_p0, %p385_p13 }
  0xca   : > { %v162_v20 = vpop.xlane.xlu1 %161 }
  0xcb   : > { %344 = vrsqrt.f32 %v162_v20  ;;  %v156_v21 = vpop.xlane.xlu0 %155 }
  0xcc   : > { %346 = vrsqrt.f32 %v156_v21 }
  0xce   : > { %v165_v22 = vpop.xlane.xlu1 %164 }
  0xcf   : > { %348 = vrsqrt.f32 %v165_v22  ;;  %v159_v23 = vpop.xlane.xlu0 %158 }
  0xd0   : > { %350 = vrsqrt.f32 %v159_v23 }
  0xd5   : > { %v345_v24 = vpop.eup %344 }
  0xd6   : > { %v347_v25 = vpop.eup %346  ;;  %v174_v26 = vmul.f32 %v345_v24, %v142_v0  ;;  %v175_v27 = vmul.f32 %v345_v24, %v143_v1 }
  0xd7   : > { %v170_v28 = vmul.f32 %v347_v25, %v138_v2  ;;  %v171_v29 = vmul.f32 %v347_v25, %v139_v5 }
  0xd8   : > { %182 = vst [vmem:[%s135_s25 + $0x20] sm:$0xff] %v174_v26  ;;  %183 = vst [vmem:[%s135_s25 + $0x28] sm:$0xff] %v175_v27 }
  0xd9   : > { %v349_v30 = vpop.eup %348  ;;  %178 = vst [vmem:[%s135_s25] sm:$0xff] %v170_v28  ;;  %179 = vst [vmem:[%s135_s25 + $0x8] sm:$0xff] %v171_v29 }
  0xda   : > { %v351_v31 = vpop.eup %350  ;;  %v176_v32 = vmul.f32 %v349_v30, %v144_v7  ;;  %v177_v33 = vmul.f32 %v349_v30, %v145_v8 }
  0xdb   : > { %v172_v34 = vmul.f32 %v351_v31, %v140_v12  ;;  %v173_v35 = vmul.f32 %v351_v31, %v141_v13 }
  0xdc   : > { %184 = vst [vmem:[%s135_s25 + $0x30] sm:$0xff] %v176_v32  ;;  %185 = vst [vmem:[%s135_s25 + $0x38] sm:$0xff] %v177_v33 }
  0xdd   : > { %180 = vst [vmem:[%s135_s25 + $0x10] sm:$0xff] %v172_v34  ;;  %181 = vst [vmem:[%s135_s25 + $0x18] sm:$0xff] %v173_v35 }
  0xde   : > { %395 = shalt.err (!%p392_p2)
}
  0xdf   : > { %s396_s13 = scalar_lea.hbm %s586_s2, 1024  ;;  %s400_s20 = scalar_lea.hbm %s633_s1, 2048 }
  0xe0   : > { %p397_p4 = scmp.ne.s32.totalorder %s586_s2, %s396_s13  ;;  %p401_p9 = scmp.lt.u32.totalorder %s586_s2, %s633_s1 }
  0xe1   : > { %p402_p1 = scmp.lt.u32.totalorder %s400_s20, %s396_s13  ;;  %p404_p6 = scmp.lt.u32.totalorder %s396_s13, %s586_s2 }
  0xe2   : > { %p398_p5 = pnand %p397_p4, %p640_p11 }
  0xe3   : > { %p403_p3 = por %p402_p1, %p401_p9 }
  0xe4   : > { %p399_p7 = pneg %p398_p5 }
  0xe5   : > { %p405_p12 = por %p404_p6, %p403_p3 }
  0xe7   : > { %p406_p13 = pnand %p405_p12, %p399_p7 }
  0xe9   : > { %409 = shalt.err (!%p406_p13)
}
  0xea   : > { %s454_s24 = smov 256   ;;  %s455_s26 = smov 16  }
  0xeb   : > { %296 = dma.vmem_to_hbm [thread:$0]  (%p640_p11), %s588_s27, 1024, %s586_s2, %s187_s10, %s454_s24, %s454_s24, %s455_s26  }
  0xec PF: > { %s216_s30 = sand.u32 1, %s436_s6   ;;  %p641_p8 = scmp.ne.s32.totalorder %s638_s19, 0 }
  0xed   : > { %p642_p10 = scmp.ge.s32.totalorder %s448_s9, 2  ;;  %s217_s17 = scalar_lea.sflag [#allocation4], %s216_s30 }
  0xef   : > { %p303_p0 = pnand %p642_p10, %p641_p8 }
  0xf1   : > { %431 = dma.done.wait (!%p303_p0), %s217_s17, 1024  }
  0xf2   : > { %433 = vsyncadd (!%p303_p0), %s217_s17, 4294966272  ;;  %p14_p2 = scmp.ge.s32.totalorder %s491_s12, 4   ;;  %s643_s6 = smov %s440_s7 }
  0xf3   : > { %s644_s7 = smov %s444_s8  ;;  %s645_s8 = smov %s503_s15 }
  0xf4   : > { %s646_s9 = smov %s491_s12  ;;  %16 = sbr.rel (!%p14_p2) target bundleno = 5 (0x5), region = 69 }
  0xfb   :  { %222 = vsyncpa [#allocation3], 1 }
  0xfc   :  { %224 = vsyncpa [#allocation3 + $0x1], 1 }
  0xfd   :  { %225 = vsyncpa [#allocation4], 1 }
  0xfe   :  { %227 = vsyncpa [#allocation4 + $0x1], 1 }

</bundles_post_ra>
